<compile_context>
chip_gen: v7x
topology: tpu7x:2x2x1
jax: 0.10.0
libtpu: 0.0.40
codegen_flags: <defaults>
</compile_context>

<pallas_src>
import jax
import jax.numpy as jnp
from jax import lax
from jax.experimental import pallas as pl
from jax.experimental.pallas import tpu as pltpu

HIDDEN = 16


def _round_up(x, m):
    return ((x + m - 1) // m) * m


def _critic_kernel(state_ref, action_ref, w1s_ref, w1a_ref, b12_ref, w2_ref,
                   w3_ref, b3_ref, q_ref):
    # fc1: h1 = relu(state @ W1_s + action @ W1_a + b1)   -> [TM, 16]
    h1 = jnp.dot(state_ref[...], w1s_ref[...],
                 preferred_element_type=jnp.float32)
    h1 = h1 + jnp.dot(action_ref[...], w1a_ref[...],
                      preferred_element_type=jnp.float32)
    h1 = jnp.maximum(h1 + b12_ref[0:1, :], 0.0)

    # fc2: h2 = relu(h1 @ W2 + b2)                        -> [TM, 16]
    h2 = jnp.dot(h1, w2_ref[...], preferred_element_type=jnp.float32)
    h2 = jnp.maximum(h2 + b12_ref[1:2, :], 0.0)

    # fc3 as an NT matmul: contract w3 [1,16] with h2 [TM,16] over the
    # feature axis -> lane-dense [1, TM] row (unmasked vector stores).
    q_row = lax.dot_general(w3_ref[...], h2, (((1,), (1,)), ((), ())),
                            preferred_element_type=jnp.float32)
    q_ref[...] = (q_row + b3_ref[0]).astype(q_ref.dtype)


def critic_forward(state, action, params, *, block_m=512):
    """Pallas equivalent of Critic.forward(state, action) -> q of shape [B, 1]."""
    w1s, w1a, b12, w2, w3, b3 = params
    B, state_dim = state.shape
    action_dim = action.shape[1]
    d_in = state_dim + action_dim

    tm = min(block_m, _round_up(B, 8))   # batch tile (multiple of 8)
    g = pl.cdiv(B, tm)                   # grid size over the batch

    flops = 2 * B * (d_in * HIDDEN + HIDDEN * HIDDEN + HIDDEN)
    bytes_accessed = 4 * (B * (d_in + 1)
                          + (d_in + HIDDEN) * HIDDEN + HIDDEN
                          + 2 * HIDDEN + 1)

    def _const_spec(shape):
        # Full-array weight/bias block that stays resident across grid steps.
        return pl.BlockSpec(shape, lambda i: (0, 0))

    q_rows = pl.pallas_call(
        _critic_kernel,
        out_shape=jax.ShapeDtypeStruct((g, tm), jnp.float32),
        grid=(g,),
        in_specs=[
            pl.BlockSpec((tm, state_dim), lambda i: (i, 0)),    # state tile
            pl.BlockSpec((tm, action_dim), lambda i: (i, 0)),   # action tile
            _const_spec((state_dim, HIDDEN)),                   # W1_s
            _const_spec((action_dim, HIDDEN)),                  # W1_a
            _const_spec((2, HIDDEN)),                           # [b1; b2]
            _const_spec((HIDDEN, HIDDEN)),                      # W2
            _const_spec((1, HIDDEN)),                           # W3 (out, in)
            pl.BlockSpec(memory_space=pltpu.MemorySpace.SMEM),  # b3 scalar
        ],
        out_specs=pl.BlockSpec((1, tm), lambda i: (i, 0)),
        compiler_params=pltpu.CompilerParams(
            dimension_semantics=("parallel",)),
        cost_estimate=pl.CostEstimate(
            flops=flops, transcendentals=0, bytes_accessed=bytes_accessed),
    )(state, action, w1s, w1a, b12, w2, w3, b3)

    q = q_rows.reshape(g * tm, 1)
    if g * tm != B:
        q = q[:B]
    return q


def init_critic_params(key, state_dim, action_dim):
    """Deterministic init matching nn.Linear defaults (uniform +/- 1/sqrt(fan_in)).

    Layout: W1 split into W1_s [state_dim,16] / W1_a [action_dim,16] ([in,out]),
    W2 [16,16] ([in,out]), W3 [1,16] (PyTorch [out,in]), b1/b2 packed as [2,16],
    b3 as shape (1,).
    """
    d_in = state_dim + action_dim

    def _uniform(k, shape, fan_in):
        bound = 1.0 / jnp.sqrt(jnp.float32(fan_in))
        return jax.random.uniform(k, shape, jnp.float32, -bound, bound)

    k1w, k1b = jax.random.split(jax.random.fold_in(key, 0))
    k2w, k2b = jax.random.split(jax.random.fold_in(key, 1))
    k3w, k3b = jax.random.split(jax.random.fold_in(key, 2))

    w1 = _uniform(k1w, (d_in, HIDDEN), d_in)
    w1s, w1a = w1[:state_dim], w1[state_dim:]
    b1 = _uniform(k1b, (HIDDEN,), d_in)
    w2 = _uniform(k2w, (HIDDEN, HIDDEN), HIDDEN)
    b2 = _uniform(k2b, (HIDDEN,), HIDDEN)
    w3 = _uniform(k3w, (1, HIDDEN), HIDDEN)          # PyTorch [out, in] layout
    b3 = _uniform(k3b, (1,), HIDDEN)

    b12 = jnp.stack([b1, b2], axis=0)                # [2, 16]
    return (w1s, w1a, b12, w2, w3, b3)


def _reference_forward(state, action, params):
    """Plain-JAX reference matching the PyTorch Critic.forward."""
    w1s, w1a, b12, w2, w3, b3 = params
    x = jnp.concatenate([state, action], axis=1)
    w1 = jnp.concatenate([w1s, w1a], axis=0)
    h = jnp.maximum(x @ w1 + b12[0], 0.0)
    h = jnp.maximum(h @ w2 + b12[1], 0.0)
    return h @ w3.T + b3


if __name__ == "__main__":
    key = jax.random.PRNGKey(0)
    k_state, k_action, k_params = jax.random.split(key, 3)

    B, state_dim, action_dim = 2, 8, 4
    state = jax.random.normal(k_state, (B, state_dim), jnp.float32)
    action = jax.random.normal(k_action, (B, action_dim), jnp.float32)

    params = init_critic_params(k_params, state_dim, action_dim)

    q = jax.block_until_ready(critic_forward(state, action, params))
    q_ref = _reference_forward(state, action, params)

    assert q.shape == (B, 1), q.shape
    assert jnp.allclose(q, q_ref, atol=1e-5, rtol=1e-5), (q, q_ref)

    print("KERNEL_OK")
</pallas_src>

<mosaic_0001>
module attributes {stable_mosaic.version = 11 : i64} {
  func.func @_critic_kernel(%arg0: i32, %arg1: memref<8x8xf32, #tpu.memory_space<vmem>>, %arg2: memref<8x4xf32, #tpu.memory_space<vmem>>, %arg3: memref<8x16xf32, #tpu.memory_space<vmem>>, %arg4: memref<4x16xf32, #tpu.memory_space<vmem>>, %arg5: memref<2x16xf32, #tpu.memory_space<vmem>>, %arg6: memref<16x16xf32, #tpu.memory_space<vmem>>, %arg7: memref<1x16xf32, #tpu.memory_space<vmem>>, %arg8: memref<1xf32, #tpu.memory_space<smem>>, %arg9: memref<1x8xf32, #tpu.memory_space<vmem>>) attributes {dimension_semantics = [#tpu.dimension_semantics<parallel>], iteration_bounds = array<i64: 1>, scalar_prefetch = 0 : i64, scratch_operands = 0 : i64, tpu.core_type = #tpu.core_type<tc>, window_params = [{transform_indices = @transform_0, window_bounds = array<i64: 8, 8>}, {transform_indices = @transform_1, window_bounds = array<i64: 8, 4>}, {pipeline_mode = #tpu.pipeline_mode<synchronous>, transform_indices = @transform_2, window_bounds = array<i64: 8, 16>}, {pipeline_mode = #tpu.pipeline_mode<synchronous>, transform_indices = @transform_3, window_bounds = array<i64: 4, 16>}, {pipeline_mode = #tpu.pipeline_mode<synchronous>, transform_indices = @transform_4, window_bounds = array<i64: 2, 16>}, {pipeline_mode = #tpu.pipeline_mode<synchronous>, transform_indices = @transform_5, window_bounds = array<i64: 16, 16>}, {pipeline_mode = #tpu.pipeline_mode<synchronous>, transform_indices = @transform_6, window_bounds = array<i64: 1, 16>}, {transform_indices = @transform_7, window_bounds = array<i64: 1>}, {transform_indices = @transform_8, window_bounds = array<i64: 1, 8>}]} {
    %c0 = arith.constant 0 : index
    %c0_0 = arith.constant 0 : index
    %0 = vector.load %arg1[%c0, %c0_0] : memref<8x8xf32, #tpu.memory_space<vmem>>, vector<8x8xf32>
    %c0_1 = arith.constant 0 : index
    %c0_2 = arith.constant 0 : index
    %1 = vector.load %arg3[%c0_1, %c0_2] : memref<8x16xf32, #tpu.memory_space<vmem>>, vector<8x16xf32>
    %cst = arith.constant dense<0.000000e+00> : vector<8x16xf32>
    %2 = tpu.matmul %0, %1, %cst {dimension_numbers = #tpu.dot_dimension_numbers<[1], [0], [0], [1], [0, 0, 1, 1], [], []>} : vector<8x8xf32>, vector<8x16xf32>, vector<8x16xf32> -> vector<8x16xf32>
    %c0_3 = arith.constant 0 : index
    %c0_4 = arith.constant 0 : index
    %3 = vector.load %arg2[%c0_3, %c0_4] : memref<8x4xf32, #tpu.memory_space<vmem>>, vector<8x4xf32>
    %c0_5 = arith.constant 0 : index
    %c0_6 = arith.constant 0 : index
    %4 = vector.load %arg4[%c0_5, %c0_6] : memref<4x16xf32, #tpu.memory_space<vmem>>, vector<4x16xf32>
    %cst_7 = arith.constant dense<0.000000e+00> : vector<8x16xf32>
    %5 = tpu.matmul %3, %4, %cst_7 {dimension_numbers = #tpu.dot_dimension_numbers<[1], [0], [0], [1], [0, 0, 1, 1], [], []>} : vector<8x4xf32>, vector<4x16xf32>, vector<8x16xf32> -> vector<8x16xf32>
    %6 = arith.addf %2, %5 : vector<8x16xf32>
    %c0_8 = arith.constant 0 : index
    %c0_9 = arith.constant 0 : index
    %7 = vector.load %arg5[%c0_8, %c0_9] : memref<2x16xf32, #tpu.memory_space<vmem>>, vector<1x16xf32>
    %8 = vector.broadcast %7 : vector<1x16xf32> to vector<8x16xf32>
    %9 = arith.addf %6, %8 : vector<8x16xf32>
    %cst_10 = arith.constant 0.000000e+00 : f32
    %10 = vector.broadcast %cst_10 : f32 to vector<8x16xf32>
    %11 = arith.maximumf %9, %10 : vector<8x16xf32>
    %c0_11 = arith.constant 0 : index
    %c0_12 = arith.constant 0 : index
    %12 = vector.load %arg6[%c0_11, %c0_12] : memref<16x16xf32, #tpu.memory_space<vmem>>, vector<16x16xf32>
    %cst_13 = arith.constant dense<0.000000e+00> : vector<8x16xf32>
    %13 = tpu.matmul %11, %12, %cst_13 {dimension_numbers = #tpu.dot_dimension_numbers<[1], [0], [0], [1], [0, 0, 1, 1], [], []>} : vector<8x16xf32>, vector<16x16xf32>, vector<8x16xf32> -> vector<8x16xf32>
    %c1 = arith.constant 1 : index
    %c0_14 = arith.constant 0 : index
    %14 = vector.load %arg5[%c1, %c0_14] : memref<2x16xf32, #tpu.memory_space<vmem>>, vector<1x16xf32>
    %15 = vector.broadcast %14 : vector<1x16xf32> to vector<8x16xf32>
    %16 = arith.addf %13, %15 : vector<8x16xf32>
    %cst_15 = arith.constant 0.000000e+00 : f32
    %17 = vector.broadcast %cst_15 : f32 to vector<8x16xf32>
    %18 = arith.maximumf %16, %17 : vector<8x16xf32>
    %c0_16 = arith.constant 0 : index
    %c0_17 = arith.constant 0 : index
    %19 = vector.load %arg7[%c0_16, %c0_17] : memref<1x16xf32, #tpu.memory_space<vmem>>, vector<1x16xf32>
    %cst_18 = arith.constant dense<0.000000e+00> : vector<1x8xf32>
    %20 = tpu.matmul %19, %18, %cst_18 {dimension_numbers = #tpu.dot_dimension_numbers<[1], [1], [0], [0], [0, 0, 1, 0], [], []>} : vector<1x16xf32>, vector<8x16xf32>, vector<1x8xf32> -> vector<1x8xf32>
    %c0_19 = arith.constant 0 : index
    %21 = memref.load %arg8[%c0_19] : memref<1xf32, #tpu.memory_space<smem>>
    %22 = vector.broadcast %21 : f32 to vector<1x8xf32>
    %23 = arith.addf %20, %22 : vector<1x8xf32>
    %c0_20 = arith.constant 0 : index
    %c0_21 = arith.constant 0 : index
    %24 = vector.load %arg9[%c0_20, %c0_21] : memref<1x8xf32, #tpu.memory_space<vmem>>, vector<1x8xf32>
    tpu.vector_store %arg9[%c0_20, %c0_21], %23 {strides = array<i32>} : memref<1x8xf32, #tpu.memory_space<vmem>>, vector<1x8xf32>,
    return
  }
  func.func @transform_0(%arg0: i32) -> (i32, i32) {
    %c0_i32 = arith.constant 0 : i32
    %c0_i32_0 = arith.constant 0 : i32
    return %arg0, %c0_i32 : i32, i32
  }
  func.func @transform_1(%arg0: i32) -> (i32, i32) {
    %c0_i32 = arith.constant 0 : i32
    %c0_i32_0 = arith.constant 0 : i32
    return %arg0, %c0_i32 : i32, i32
  }
  func.func @transform_2(%arg0: i32) -> (i32, i32) {
    %c0_i32 = arith.constant 0 : i32
    %c0_i32_0 = arith.constant 0 : i32
    %c0_i32_1 = arith.constant 0 : i32
    return %c0_i32, %c0_i32_0 : i32, i32
  }
  func.func @transform_3(%arg0: i32) -> (i32, i32) {
    %c0_i32 = arith.constant 0 : i32
    %c0_i32_0 = arith.constant 0 : i32
    %c0_i32_1 = arith.constant 0 : i32
    return %c0_i32, %c0_i32_0 : i32, i32
  }
  func.func @transform_4(%arg0: i32) -> (i32, i32) {
    %c0_i32 = arith.constant 0 : i32
    %c0_i32_0 = arith.constant 0 : i32
    %c0_i32_1 = arith.constant 0 : i32
    return %c0_i32, %c0_i32_0 : i32, i32
  }
  func.func @transform_5(%arg0: i32) -> (i32, i32) {
    %c0_i32 = arith.constant 0 : i32
    %c0_i32_0 = arith.constant 0 : i32
    %c0_i32_1 = arith.constant 0 : i32
    return %c0_i32, %c0_i32_0 : i32, i32
  }
  func.func @transform_6(%arg0: i32) -> (i32, i32) {
    %c0_i32 = arith.constant 0 : i32
    %c0_i32_0 = arith.constant 0 : i32
    %c0_i32_1 = arith.constant 0 : i32
    return %c0_i32, %c0_i32_0 : i32, i32
  }
  func.func @transform_7(%arg0: i32) -> i32 {
    %c0_i32 = arith.constant 0 : i32
    %c0_i32_0 = arith.constant 0 : i32
    return %c0_i32 : i32
  }
  func.func @transform_8(%arg0: i32) -> (i32, i32) {
    %c0_i32 = arith.constant 0 : i32
    %c0_i32_0 = arith.constant 0 : i32
    return %arg0, %c0_i32 : i32, i32
  }
}

</mosaic_0001>

<bundles_post_ra>
// kernel: tpu_custom_call.1
= control target key start
LH: loop header
LB: loop body
LE: loop exit
PB: predicated region body
PF: predicated region fallthrough
CT: control target
= control target key end

     0   :  { %14 = vsyncpa [#allocation4], 0  ;;  %s687_s0 = inlined_call_operand.vmem [shape: f32[2,8], index: 0, kind: input, shape index: {}]   ;;  %s688_s1 = inlined_call_operand.hbm [shape: f32[2,4], index: 1, kind: input, shape index: {}]   ;;  %s689_s2 = inlined_call_operand.hbm [shape: f32[8,16], index: 2, kind: input, shape index: {}]   ;;  %s690_s3 = inlined_call_operand.vmem [shape: f32[4,16], index: 3, kind: input, shape index: {}]   ;;  %s691_s4 = inlined_call_operand.hbm [shape: f32[2,16], index: 4, kind: input, shape index: {}]   ;;  %s692_s5 = inlined_call_operand.vmem [shape: f32[16,16], index: 5, kind: input, shape index: {}]   ;;  %s693_s6 = inlined_call_operand.vmem [shape: f32[1,16], index: 6, kind: input, shape index: {}]   ;;  %s694_s7 = inlined_call_operand.<no memory space> [shape: f32[1], index: 7, kind: input, shape index: {}]   ;;  %s695_s8 = inlined_call_operand.hbm [shape: f32[1,8], index: 8, kind: output, shape index: {}]  }
   0x1   :  { %15 = vsyncpa [#allocation7], 0 }
   0x2   :  { %16 = vsyncpa [#allocation5], 0 }
   0x3   :  { %23 = vsyncadd [#allocation4], 96  ;;  %s555_s27 = smov [#allocation6]   ;;  %s556_s29 = smov [#allocation3]  }
   0x4   :  { %s37_s28 = sshll.u32 %s555_s27, 4  ;;  %s24_s30 = sshll.u32 %s556_s29, 4  ;;  %s38_s28 = int_to_ptr.vmem [resolvable:$true] %s37_s28  ;;  %s609_s30 = int_to_ptr.vmem [resolvable:$true] %s24_s30 }
   0x5   :  { %s461_s11 = scalar_lea.hbm %s689_s2, 128 }
   0x6   :  { %p462_p0 = scmp.ne.s32.totalorder %s689_s2, %s461_s11  ;;  %p465_p1 = scmp.lt.u32.totalorder %s461_s11, %s689_s2 }
   0x8   :  { %p467_p2 = pnand %p465_p1, %p462_p0 }
   0xa   :  { %470 = shalt.err (!%p467_p2)
}
   0xb   :  { %s471_s16 = scalar_lea.vmem %s38_s28, 128  ;;  %p476_p4 = scmp.lt.s32.totalorder %s38_s28, %s38_s28 }
   0xc   :  { %p472_p3 = scmp.ne.s32.totalorder %s38_s28, %s471_s16  ;;  %p477_p5 = scmp.lt.s32.totalorder %s471_s16, %s471_s16 }
   0xe   :  { %p478_p6 = por %p477_p5, %p476_p4 }
  0x10   :  { %p479_p7 = pnand %p478_p6, %p472_p3 }
  0x12   :  { %482 = shalt.err (!%p479_p7)
}
  0x13   :  { %40 = dma.hbm_to_vmem [thread:$0]  %s689_s2, 128, %s38_s28, [#allocation7]  }
  0x14   :  { %s483_s21 = scalar_lea.hbm %s688_s1, 32 }
  0x15   :  { %p484_p8 = scmp.ne.s32.totalorder %s688_s1, %s483_s21  ;;  %p487_p9 = scmp.lt.u32.totalorder %s483_s21, %s688_s1 }
  0x17   :  { %p489_p10 = pnand %p487_p9, %p484_p8 }
  0x19   :  { %492 = shalt.err (!%p489_p10)
}
  0x1a   :  { %s493_s26 = scalar_lea.vmem %s609_s30, 32  ;;  %s497_s2 = scalar_lea.vmem %s609_s30, 128 }
  0x1b   :  { %p494_p11 = scmp.ne.s32.totalorder %s609_s30, %s493_s26  ;;  %p498_p12 = scmp.lt.s32.totalorder %s609_s30, %s609_s30 }
  0x1c   :  { %p499_p13 = scmp.lt.s32.totalorder %s497_s2, %s493_s26 }
  0x1e   :  { %p500_p0 = por %p499_p13, %p498_p12 }
  0x20   :  { %p501_p1 = pnand %p500_p0, %p494_p11 }
  0x22   :  { %504 = shalt.err (!%p501_p1)
}
  0x23   :  { %s557_s27 = smov 32   ;;  %s558_s28 = smov 2  }
  0x24   :  { %30 = dma.hbm_to_vmem [thread:$0]  %s688_s1, 32, %s609_s30, [#allocation4], %s557_s27, %s557_s27, %s558_s28  }
  0x25   :  { %s559_s10 = smov [#allocation8]   ;;  %s505_s14 = scalar_lea.hbm %s691_s4, 32 }
  0x26   :  { %s49_s11 = sshll.u32 %s559_s10, 4  ;;  %p506_p2 = scmp.ne.s32.totalorder %s691_s4, %s505_s14  ;;  %s50_s11 = int_to_ptr.vmem [resolvable:$true] %s49_s11 }
  0x27   :  { %p509_p3 = scmp.lt.u32.totalorder %s505_s14, %s691_s4 }
  0x29   :  { %p511_p4 = pnand %p509_p3, %p506_p2 }
  0x2b   :  { %514 = shalt.err (!%p511_p4)
}
  0x2c   :  { %s515_s19 = scalar_lea.vmem %s50_s11, 32  ;;  %p520_p6 = scmp.lt.s32.totalorder %s50_s11, %s50_s11 }
  0x2d   :  { %p516_p5 = scmp.ne.s32.totalorder %s50_s11, %s515_s19  ;;  %p521_p7 = scmp.lt.s32.totalorder %s515_s19, %s515_s19 }
  0x2f   :  { %p522_p8 = por %p521_p7, %p520_p6 }
  0x31   :  { %p523_p9 = pnand %p522_p8, %p516_p5 }
  0x33   :  { %526 = shalt.err (!%p523_p9)
}
  0x34   :  { %52 = dma.hbm_to_vmem [thread:$0]  %s691_s4, 32, %s50_s11, [#allocation7]  }
  0x35   :  { %549 = dma.done.wait [#allocation4], 128  }
  0x36   :  { %550 = vsyncadd [#allocation4], 4294967168 }
  0x37   :  { %551 = dma.done.wait [#allocation7], 160  }
  0x38   :  { %552 = vsyncadd [#allocation7], 4294967136  ;;  %v560_v0 = vmov 0.0   ;;  %vm561_vm0 = vmmov 0   ;;  %vm76_vm1 = vcmask 1043456   ;;  %vm72_vm2 = vcmask 31744  }
  0x39   :  { %427 = vmatprep.subr.mxu0 %v560_v0  ;;  %432 = vmatprep.subr.mxu1 %v560_v0  ;;  %vm150_vm3 = vcmask 64512   ;;  %v71_v1 = vld [vmem:[%s690_s3] sm:$0xf]  ;;  %v69_v2 = vld [vmem:[#allocation6] sm:$0xff]  ;;  %v562_v8 = vmov 0.0|0.0   ;;  %vm238_vm4 = vcmask 130048   ;;  %v315_v23 = vstv %s694_s7 }
  0x3a   :  { %429 = vmatprep.mubr.msk.f32.mxu0 %vm561_vm0, %v560_v0  ;;  %434 = vmatprep.mubr.msk.f32.mxu1 %vm561_vm0, %v560_v0  ;;  %v70_v3 = vld [vmem:[#allocation3] sm:$0xff]  ;;  %v232_v6 = vld [vmem:[%s692_s5 + $0x8] sm:$0xff]  ;;  %v413_v11 = vld [vmem:[#allocation8] ss:$0 sm:$0xff]  ;;  %s563_s27 = smov [#allocation9]   ;;  %vm392_vm5 = vcmask 57344  }
  0x3b   :  { %428 = vmatpush3.msk.msra.mxu0 %vm76_vm1, %v71_v1  ;;  %433 = vmatpush3.msra.mxu1 %v69_v2  ;;  %v68_v4 = vld [vmem:[%s687_s0] sm:$0xff]  ;;  %v414_v17 = vld [vmem:[#allocation8 + $0x1] ss:$0 sm:$0xff]  ;;  %s400_s28 = sshll.u32 %s563_s27, 4  ;;  %s401_s28 = int_to_ptr.vmem [resolvable:$true] %s400_s28 }
  0x3c   :  { %430 = vmatmul.mubr.msk.f32.vlgmr.msra.gmra.mrb[0].mxu0 %vm72_vm2, %v70_v3  ;;  %435 = vmatmul.mubr.msk.f32.vlgmr.msra.gmra.mrb[0].mxu1 %vm150_vm3, %v68_v4  ;;  %v231_v5 = vld [vmem:[%s692_s5] sm:$0xff]  ;;  %s527_s29 = scalar_lea.vmem %s401_s28, 16  ;;  %s531_s9 = scalar_lea.vmem %s401_s28, 32 }
  0x3d   :  { %441 = vmatprep.mubr.msk.f32.mxu0 %vm561_vm0, %v560_v0  ;;  %444 = vmatprep.subr.mxu1 %v560_v0  ;;  %v450_v7 = vpack.c.bf16 %v232_v6, %v231_v5  ;;  %v313_v22 = vld [vmem:[%s693_s6] sm:$0x1]  ;;  %p528_p10 = scmp.ne.s32.totalorder %s401_s28, %s527_s29  ;;  %p532_p11 = scmp.lt.s32.totalorder %s401_s28, %s401_s28 }
  0x3e   :  { %446 = vmatprep.mubr.msk.f32.mxu1 %vm561_vm0, %v560_v0  ;;  %449 = vmatprep.subr.bf16.mxu0 %v562_v8  ;;  %p533_p12 = scmp.lt.s32.totalorder %s531_s9, %s527_s29 }
  0x3f   :  { %451 = vmatpush3.bf16.msra.mxu0 %v450_v7 }
  0x40   :  { %p534_p13 = por %p533_p12, %p532_p11 }
  0x42   :  { %p535_p0 = pnand %p534_p13, %p528_p10 }
 0x10f   :  { %v146_v9 = vpop.f32.mrb[0].mxu0  ;;  %v220_v10 = vpop.f32.mrb[0].mxu1 }
 0x110   :  { %v221_v12 = vadd.f32 %v220_v10, %v146_v9  ;;  %v431_v13 = vpop.f32.mrb[1].mxu0  ;;  %v436_v14 = vpop.f32.mrb[1].mxu1 }
 0x112   :  { %v229_v15 = vadd.f32 %v413_v11, %v221_v12 }
 0x114   :  { %v230_v16 = vmax.f32 %v229_v15, 0.0 }
 0x116   :  { %442 = vmatmul.mubr.msk.f32.vlgmr.msra.gmra.mrb[2].mxu0 %vm238_vm4, %v230_v16 }
 0x1e9   :  { %v308_v18 = vpop.f32.mrb[2].mxu0 }
 0x1ea   :  { %v309_v19 = vadd.f32 %v414_v17, %v308_v18  ;;  %v443_v20 = vpop.f32.mrb[3].mxu0 }
 0x1ec   :  { %v312_v21 = vmax.f32 %v309_v19, 0.0 }
 0x1ee   :  { %445 = vmatpush3.xpose.msk.msra.mxu1 %vm238_vm4, %v312_v21 }
 0x1f1   :  { %447 = vmatmul.mubr.msk.f32.vlgmr.msra.gmra.mrb[2].mxu1 %vm238_vm4, %v313_v22 }
 0x2c4   :  { %v388_v24 = vpop.f32.mrb[2].mxu1 }
 0x2c5   :  { %v389_v25 = vadd.f32 %v388_v24, %v315_v23  ;;  %v448_v26 = vpop.f32.mrb[3].mxu1 }
 0x2c7   :  { %393 = vst.msk [vmem:[#allocation9] sm:$0x1] %vm392_vm5, %v389_v25 }
 0x2c8   :  { %538 = shalt.err (!%p535_p0)
}
 0x2c9   :  { %s539_s7 = scalar_lea.hbm %s695_s8, 16 }
 0x2ca   :  { %p540_p1 = scmp.ne.s32.totalorder %s695_s8, %s539_s7  ;;  %p543_p2 = scmp.lt.u32.totalorder %s539_s7, %s695_s8 }
 0x2cc   :  { %p545_p3 = pnand %p543_p2, %p540_p1 }
 0x2ce   :  { %548 = shalt.err (!%p545_p3)
}
 0x2cf   :  { %403 = dma.vmem_to_hbm [thread:$0]  %s401_s28, 16, %s695_s8, [#allocation5]  }
 0x2d0   :  { %553 = dma.done.wait [#allocation5], 16  }
 0x2d1   :  { %554 = vsyncadd [#allocation5], 4294967280 }
 0x2d2   :  { %407 = vsyncpa [#allocation4], 1 }
 0x2d3   :  { %408 = vsyncpa [#allocation7], 1 }
 0x2d4   :  { %409 = vsyncpa [#allocation5], 1 }

</bundles_post_ra>
